<compile_context>
chip_gen: v7x
topology: tpu7x:2x2x1
jax: 0.10.0
libtpu: 0.0.40
codegen_flags: <defaults>
</compile_context>

<pallas_src>
import functools

import jax
import jax.numpy as jnp
from jax.experimental import pallas as pl
from jax.experimental.pallas import tpu as pltpu


# ---------------------------------------------------------------------------
# Fused kernel: LayerNorm + multi-head attention for TB batch rows per grid step
# ---------------------------------------------------------------------------
def _prenorm_attention_kernel(x_ref, g_ref, b_ref, wqkv_ref, wo_ref, bo_ref,
                              o_ref, *, eps, heads, dim_head):
    # Block shapes:
    #   x_ref    : (TB, N, dim) f32        g_ref/b_ref/bo_ref : (1, dim) f32
    #   wqkv_ref : (dim, 3*H*dh) bf16      (softmax scale folded into the Q cols)
    #   wo_ref   : (H*dh, dim)  bf16
    #   o_ref    : (TB, N, dim) f32
    TB, N, dim = x_ref.shape
    H, dh = heads, dim_head
    inner = H * dh
    M = TB * N

    x = x_ref[...].reshape(M, dim)                                  # (M, dim) f32

    # ---- LayerNorm (f32, nn.LayerNorm eps / biased-var semantics) -----------
    mean = jnp.mean(x, axis=-1, keepdims=True)
    xc = x - mean
    var = jnp.mean(xc * xc, axis=-1, keepdims=True)
    xn = xc * jax.lax.rsqrt(var + eps) * g_ref[...] + b_ref[...]    # (M, dim)

    # ---- single packed QKV projection (bf16 operands, f32 accumulation) -----
    qkv = jnp.dot(xn.astype(jnp.bfloat16), wqkv_ref[...],
                  preferred_element_type=jnp.float32)               # (M, 3*inner)

    # ---- per-head attention (static loop; H is a small compile-time const) --
    att_heads = []
    for h in range(H):
        q_h = qkv[:, h * dh:(h + 1) * dh].reshape(TB, N, dh)                  # pre-scaled
        k_h = qkv[:, inner + h * dh:inner + (h + 1) * dh].reshape(TB, N, dh)
        v_h = qkv[:, 2 * inner + h * dh:2 * inner + (h + 1) * dh].reshape(TB, N, dh)

        dots = jnp.einsum('bnd,bmd->bnm', q_h.astype(jnp.bfloat16),
                          k_h.astype(jnp.bfloat16),
                          preferred_element_type=jnp.float32)       # (TB, N, N)
        dots = dots - jnp.max(dots, axis=-1, keepdims=True)
        p = jnp.exp(dots)
        denom = jnp.sum(p, axis=-1, keepdims=True)                  # (TB, N, 1)

        att = jnp.einsum('bnm,bmd->bnd', p.astype(jnp.bfloat16),
                         v_h.astype(jnp.bfloat16),
                         preferred_element_type=jnp.float32)        # (TB, N, dh)
        # normalize AFTER the attend matmul: H*N*dh multiplies instead of H*N*N
        att = att * pl.reciprocal(denom, approx=True)
        att_heads.append(att.reshape(M, dh))

    # ---- fused concat-heads @ W_out (single depth-inner contraction) --------
    att_cat = jnp.concatenate(att_heads, axis=-1)                   # (M, inner)
    out = jnp.dot(att_cat.astype(jnp.bfloat16), wo_ref[...],
                  preferred_element_type=jnp.float32) + bo_ref[...]  # (M, dim)
    o_ref[...] = out.reshape(TB, N, dim)


# ---------------------------------------------------------------------------
# Parameter preparation (one-time, host side): packed bf16 QKV / out weights,
# softmax scale folded into the Q columns (in f32, then cast).
# ---------------------------------------------------------------------------
def prepare_params(raw, *, heads, dim_head):
    dim = raw["w_out"].shape[1]
    inner = heads * dim_head
    scale = dim_head ** -0.5                       # 0.125 here: exact in bf16
    wqkv = raw["w_qkv"].astype(jnp.float32)
    wqkv = wqkv.at[:, :inner].multiply(scale)      # fold softmax scale into W_q
    return {
        "gamma": raw["gamma"].astype(jnp.float32).reshape(1, dim),
        "beta":  raw["beta"].astype(jnp.float32).reshape(1, dim),
        "w_qkv": wqkv.astype(jnp.bfloat16),                        # (dim, 3*inner)
        "w_out": raw["w_out"].astype(jnp.bfloat16),                # (inner, dim)
        "b_out": raw["b_out"].astype(jnp.float32).reshape(1, dim),
    }


# ---------------------------------------------------------------------------
# Wrapper: single fused pallas_call, grid over batch tiles of TB rows
# ---------------------------------------------------------------------------
def prenorm_attention_forward(x, params, *, heads, dim_head, eps=1e-5,
                              target_rows=256):
    B, N, dim = x.shape
    inner = heads * dim_head

    # Row batching: largest divisor TB of B with TB*N <= target_rows, so each
    # grid step feeds M = TB*N rows to the MXU.  (For tiny demo B this may
    # collapse the grid to a single step; at real batch sizes keep >= 4-8 steps
    # so v7x's two TensorCores both stay busy.)
    tb = 1
    for cand in range(1, B + 1):
        if B % cand == 0 and cand * N <= max(target_rows, N):
            tb = cand
    grid = (B // tb,)

    kernel = functools.partial(_prenorm_attention_kernel, eps=eps,
                               heads=heads, dim_head=dim_head)

    def build_and_call(single_buffer_weights):
        def const_spec(shape):
            # constant index_map -> block never changes; single-buffer it so the
            # resident weights don't pay 2x VMEM (matters at ViT scale on v7x).
            if single_buffer_weights:
                return pl.BlockSpec(shape, lambda b: (0,) * len(shape),
                                    pipeline_mode=pl.Buffered(1))
            return pl.BlockSpec(shape, lambda b: (0,) * len(shape))

        return pl.pallas_call(
            kernel,
            out_shape=jax.ShapeDtypeStruct((B, N, dim), jnp.float32),
            grid=grid,
            in_specs=[
                pl.BlockSpec((tb, N, dim), lambda b: (b, 0, 0)),   # x
                const_spec((1, dim)),                              # gamma
                const_spec((1, dim)),                              # beta
                const_spec((dim, 3 * inner)),                      # packed W_qkv
                const_spec((inner, dim)),                          # W_out
                const_spec((1, dim)),                              # b_out
            ],
            out_specs=pl.BlockSpec((tb, N, dim), lambda b: (b, 0, 0)),
            compiler_params=pltpu.CompilerParams(
                dimension_semantics=("parallel",),                 # v7x: 2 TCs
                vmem_limit_bytes=32 * 1024 * 1024),                # explicit budget
        )(x, params["gamma"], params["beta"], params["w_qkv"],
          params["w_out"], params["b_out"])

    try:
        return build_and_call(True)
    except Exception:
        # pipeline_mode=pl.Buffered(1) not supported by this JAX build's
        # pallas_call pipeline path; default double-buffering is still correct.
        return build_and_call(False)


# ---------------------------------------------------------------------------
# Pure-JAX f32 reference (PreNorm: LayerNorm -> Attention)
# ---------------------------------------------------------------------------
def prenorm_attention_reference(x, raw, *, heads, dim_head, eps=1e-5):
    B, N, dim = x.shape
    inner = heads * dim_head
    scale = dim_head ** -0.5
    mean = x.mean(-1, keepdims=True)
    var = ((x - mean) ** 2).mean(-1, keepdims=True)
    xn = (x - mean) / jnp.sqrt(var + eps) * raw["gamma"] + raw["beta"]
    qkv = xn @ raw["w_qkv"]
    q, k, v = jnp.split(qkv, 3, axis=-1)
    th = lambda t: t.reshape(B, N, heads, dim_head).transpose(0, 2, 1, 3)
    q, k, v = map(th, (q, k, v))
    attn = jax.nn.softmax(jnp.einsum("bhnd,bhmd->bhnm", q, k) * scale, axis=-1)
    out = jnp.einsum("bhnm,bhmd->bhnd", attn, v)
    out = out.transpose(0, 2, 1, 3).reshape(B, N, inner)
    return out @ raw["w_out"] + raw["b_out"]


# ---------------------------------------------------------------------------
if __name__ == "__main__":
    # Small shapes consistent with the module: dim=32, heads=2, dim_head=64.
    B, N, dim = 2, 8, 32
    heads, dim_head = 2, 64
    inner_dim = heads * dim_head

    key = jax.random.PRNGKey(0)
    kx, kqkv, kwo, kbo, kg, kb = jax.random.split(key, 6)

    x = jax.random.normal(kx, (B, N, dim), dtype=jnp.float32)

    raw = {
        "gamma": 1.0 + 0.1 * jax.random.normal(kg, (dim,), jnp.float32),
        "beta":  0.1 * jax.random.normal(kb, (dim,), jnp.float32),
        "w_qkv": jax.random.normal(kqkv, (dim, 3 * inner_dim), jnp.float32) * 0.05,
        "w_out": jax.random.normal(kwo, (inner_dim, dim), jnp.float32) * 0.05,
        "b_out": jax.random.normal(kbo, (dim,), jnp.float32) * 0.05,
    }

    params = prepare_params(raw, heads=heads, dim_head=dim_head)
    out = prenorm_attention_forward(x, params, heads=heads, dim_head=dim_head)
    out = jax.block_until_ready(out)

    ref = prenorm_attention_reference(x, raw, heads=heads, dim_head=dim_head)
    assert out.shape == (B, N, dim)
    # bf16 MXU operands + approx reciprocal => loose-but-safe tolerance vs f32 ref
    assert jnp.allclose(out, ref, atol=2e-2, rtol=2e-2), (
        f"mismatch vs reference, max abs err {jnp.max(jnp.abs(out - ref))}")

    print("KERNEL_OK")
</pallas_src>

<mosaic_0001>
module attributes {stable_mosaic.version = 11 : i64} {
  func.func @_prenorm_attention_kernel(%arg0: i32, %arg1: memref<2x8x32xf32, #tpu.memory_space<vmem>>, %arg2: memref<1x32xf32, #tpu.memory_space<vmem>>, %arg3: memref<1x32xf32, #tpu.memory_space<vmem>>, %arg4: memref<32x384xbf16, #tpu.memory_space<vmem>>, %arg5: memref<128x32xbf16, #tpu.memory_space<vmem>>, %arg6: memref<1x32xf32, #tpu.memory_space<vmem>>, %arg7: memref<2x8x32xf32, #tpu.memory_space<vmem>>) attributes {dimension_semantics = [#tpu.dimension_semantics<parallel>], iteration_bounds = array<i64: 1>, scalar_prefetch = 0 : i64, scratch_operands = 0 : i64, tpu.core_type = #tpu.core_type<tc>, window_params = [{transform_indices = @transform_0, window_bounds = array<i64: 2, 8, 32>}, {pipeline_mode = #tpu.pipeline_mode<synchronous>, transform_indices = @transform_1, window_bounds = array<i64: 1, 32>}, {pipeline_mode = #tpu.pipeline_mode<synchronous>, transform_indices = @transform_2, window_bounds = array<i64: 1, 32>}, {pipeline_mode = #tpu.pipeline_mode<synchronous>, transform_indices = @transform_3, window_bounds = array<i64: 32, 384>}, {pipeline_mode = #tpu.pipeline_mode<synchronous>, transform_indices = @transform_4, window_bounds = array<i64: 128, 32>}, {pipeline_mode = #tpu.pipeline_mode<synchronous>, transform_indices = @transform_5, window_bounds = array<i64: 1, 32>}, {transform_indices = @transform_6, window_bounds = array<i64: 2, 8, 32>}]} {
    %c0 = arith.constant 0 : index
    %c0_0 = arith.constant 0 : index
    %c0_1 = arith.constant 0 : index
    %0 = vector.load %arg1[%c0, %c0_0, %c0_1] : memref<2x8x32xf32, #tpu.memory_space<vmem>>, vector<2x8x32xf32>
    %1 = vector.shape_cast %0 : vector<2x8x32xf32> to vector<16x32xf32>
    %cst = arith.constant dense<0.000000e+00> : vector<16xf32>
    %2 = vector.multi_reduction <add>, %1, %cst [1] : vector<16x32xf32> to vector<16xf32>
    %3 = vector.shape_cast %2 : vector<16xf32> to vector<16x1xf32>
    %cst_2 = arith.constant 3.200000e+01 : f32
    %4 = vector.broadcast %cst_2 : f32 to vector<16x1xf32>
    %5 = arith.divf %3, %4 : vector<16x1xf32>
    %6 = vector.broadcast %5 : vector<16x1xf32> to vector<16x32xf32>
    %7 = arith.subf %1, %6 : vector<16x32xf32>
    %8 = arith.mulf %7, %7 : vector<16x32xf32>
    %cst_3 = arith.constant dense<0.000000e+00> : vector<16xf32>
    %9 = vector.multi_reduction <add>, %8, %cst_3 [1] : vector<16x32xf32> to vector<16xf32>
    %10 = vector.shape_cast %9 : vector<16xf32> to vector<16x1xf32>
    %cst_4 = arith.constant 3.200000e+01 : f32
    %11 = vector.broadcast %cst_4 : f32 to vector<16x1xf32>
    %12 = arith.divf %10, %11 : vector<16x1xf32>
    %cst_5 = arith.constant 9.99999974E-6 : f32
    %13 = vector.broadcast %cst_5 : f32 to vector<16x1xf32>
    %14 = arith.addf %12, %13 : vector<16x1xf32>
    %15 = math.rsqrt %14 : vector<16x1xf32>
    %16 = vector.broadcast %15 : vector<16x1xf32> to vector<16x32xf32>
    %17 = arith.mulf %7, %16 : vector<16x32xf32>
    %c0_6 = arith.constant 0 : index
    %c0_7 = arith.constant 0 : index
    %18 = vector.load %arg2[%c0_6, %c0_7] : memref<1x32xf32, #tpu.memory_space<vmem>>, vector<1x32xf32>
    %19 = vector.broadcast %18 : vector<1x32xf32> to vector<16x32xf32>
    %20 = arith.mulf %17, %19 : vector<16x32xf32>
    %c0_8 = arith.constant 0 : index
    %c0_9 = arith.constant 0 : index
    %21 = vector.load %arg3[%c0_8, %c0_9] : memref<1x32xf32, #tpu.memory_space<vmem>>, vector<1x32xf32>
    %22 = vector.broadcast %21 : vector<1x32xf32> to vector<16x32xf32>
    %23 = arith.addf %20, %22 : vector<16x32xf32>
    %24 = arith.truncf %23 : vector<16x32xf32> to vector<16x32xbf16>
    %c0_10 = arith.constant 0 : index
    %c0_11 = arith.constant 0 : index
    %25 = vector.load %arg4[%c0_10, %c0_11] : memref<32x384xbf16, #tpu.memory_space<vmem>>, vector<32x384xbf16>
    %cst_12 = arith.constant dense<0.000000e+00> : vector<16x384xf32>
    %26 = tpu.matmul %24, %25, %cst_12 {dimension_numbers = #tpu.dot_dimension_numbers<[1], [0], [0], [1], [0, 0, 1, 1], [], []>} : vector<16x32xbf16>, vector<32x384xbf16>, vector<16x384xf32> -> vector<16x384xf32>
    %27 = vector.extract_strided_slice %26 {offsets = [0, 0], sizes = [16, 64], strides = [1, 1]} : vector<16x384xf32> to vector<16x64xf32>
    %28 = vector.shape_cast %27 : vector<16x64xf32> to vector<2x8x64xf32>
    %29 = vector.extract_strided_slice %26 {offsets = [0, 128], sizes = [16, 64], strides = [1, 1]} : vector<16x384xf32> to vector<16x64xf32>
    %30 = vector.shape_cast %29 : vector<16x64xf32> to vector<2x8x64xf32>
    %31 = vector.extract_strided_slice %26 {offsets = [0, 256], sizes = [16, 64], strides = [1, 1]} : vector<16x384xf32> to vector<16x64xf32>
    %32 = vector.shape_cast %31 : vector<16x64xf32> to vector<2x8x64xf32>
    %33 = arith.truncf %28 : vector<2x8x64xf32> to vector<2x8x64xbf16>
    %34 = arith.truncf %30 : vector<2x8x64xf32> to vector<2x8x64xbf16>
    "tpu.trace_start"() <{level = 10 : i32, message = "bnd,bmd->bnm"}> : () -> ()
    %cst_13 = arith.constant dense<0.000000e+00> : vector<2x8x8xf32>
    %35 = tpu.matmul %33, %34, %cst_13 {dimension_numbers = #tpu.dot_dimension_numbers<[2], [2], [1], [1], [0, 0, 0, 1, 1, 1], [0], [0]>} : vector<2x8x64xbf16>, vector<2x8x64xbf16>, vector<2x8x8xf32> -> vector<2x8x8xf32>
    "tpu.trace_stop"() : () -> ()
    %cst_14 = arith.constant dense<0xFF800000> : vector<2x8xf32>
    %36 = vector.multi_reduction <maximumf>, %35, %cst_14 [2] : vector<2x8x8xf32> to vector<2x8xf32>
    %37 = vector.shape_cast %36 : vector<2x8xf32> to vector<2x8x1xf32>
    %38 = vector.broadcast %37 : vector<2x8x1xf32> to vector<2x8x8xf32>
    %39 = arith.subf %35, %38 : vector<2x8x8xf32>
    %40 = math.exp %39 : vector<2x8x8xf32>
    %cst_15 = arith.constant dense<0.000000e+00> : vector<2x8xf32>
    %41 = vector.multi_reduction <add>, %40, %cst_15 [2] : vector<2x8x8xf32> to vector<2x8xf32>
    %42 = vector.shape_cast %41 : vector<2x8xf32> to vector<2x8x1xf32>
    %43 = arith.truncf %40 : vector<2x8x8xf32> to vector<2x8x8xbf16>
    %44 = arith.truncf %32 : vector<2x8x64xf32> to vector<2x8x64xbf16>
    "tpu.trace_start"() <{level = 10 : i32, message = "bnm,bmd->bnd"}> : () -> ()
    %cst_16 = arith.constant dense<0.000000e+00> : vector<2x8x64xf32>
    %45 = tpu.matmul %43, %44, %cst_16 {dimension_numbers = #tpu.dot_dimension_numbers<[2], [1], [1], [2], [0, 0, 0, 1, 1, 2], [0], [0]>} : vector<2x8x8xbf16>, vector<2x8x64xbf16>, vector<2x8x64xf32> -> vector<2x8x64xf32>
    "tpu.trace_stop"() : () -> ()
    %46 = tpu.reciprocal %42 {approx = true} : vector<2x8x1xf32> -> vector<2x8x1xf32>
    %47 = vector.broadcast %46 : vector<2x8x1xf32> to vector<2x8x64xf32>
    %48 = arith.mulf %45, %47 : vector<2x8x64xf32>
    %49 = vector.shape_cast %48 : vector<2x8x64xf32> to vector<16x64xf32>
    %50 = vector.extract_strided_slice %26 {offsets = [0, 64], sizes = [16, 64], strides = [1, 1]} : vector<16x384xf32> to vector<16x64xf32>
    %51 = vector.shape_cast %50 : vector<16x64xf32> to vector<2x8x64xf32>
    %52 = vector.extract_strided_slice %26 {offsets = [0, 192], sizes = [16, 64], strides = [1, 1]} : vector<16x384xf32> to vector<16x64xf32>
    %53 = vector.shape_cast %52 : vector<16x64xf32> to vector<2x8x64xf32>
    %54 = vector.extract_strided_slice %26 {offsets = [0, 320], sizes = [16, 64], strides = [1, 1]} : vector<16x384xf32> to vector<16x64xf32>
    %55 = vector.shape_cast %54 : vector<16x64xf32> to vector<2x8x64xf32>
    %56 = arith.truncf %51 : vector<2x8x64xf32> to vector<2x8x64xbf16>
    %57 = arith.truncf %53 : vector<2x8x64xf32> to vector<2x8x64xbf16>
    "tpu.trace_start"() <{level = 10 : i32, message = "bnd,bmd->bnm"}> : () -> ()
    %cst_17 = arith.constant dense<0.000000e+00> : vector<2x8x8xf32>
    %58 = tpu.matmul %56, %57, %cst_17 {dimension_numbers = #tpu.dot_dimension_numbers<[2], [2], [1], [1], [0, 0, 0, 1, 1, 1], [0], [0]>} : vector<2x8x64xbf16>, vector<2x8x64xbf16>, vector<2x8x8xf32> -> vector<2x8x8xf32>
    "tpu.trace_stop"() : () -> ()
    %cst_18 = arith.constant dense<0xFF800000> : vector<2x8xf32>
    %59 = vector.multi_reduction <maximumf>, %58, %cst_18 [2] : vector<2x8x8xf32> to vector<2x8xf32>
    %60 = vector.shape_cast %59 : vector<2x8xf32> to vector<2x8x1xf32>
    %61 = vector.broadcast %60 : vector<2x8x1xf32> to vector<2x8x8xf32>
    %62 = arith.subf %58, %61 : vector<2x8x8xf32>
    %63 = math.exp %62 : vector<2x8x8xf32>
    %cst_19 = arith.constant dense<0.000000e+00> : vector<2x8xf32>
    %64 = vector.multi_reduction <add>, %63, %cst_19 [2] : vector<2x8x8xf32> to vector<2x8xf32>
    %65 = vector.shape_cast %64 : vector<2x8xf32> to vector<2x8x1xf32>
    %66 = arith.truncf %63 : vector<2x8x8xf32> to vector<2x8x8xbf16>
    %67 = arith.truncf %55 : vector<2x8x64xf32> to vector<2x8x64xbf16>
    "tpu.trace_start"() <{level = 10 : i32, message = "bnm,bmd->bnd"}> : () -> ()
    %cst_20 = arith.constant dense<0.000000e+00> : vector<2x8x64xf32>
    %68 = tpu.matmul %66, %67, %cst_20 {dimension_numbers = #tpu.dot_dimension_numbers<[2], [1], [1], [2], [0, 0, 0, 1, 1, 2], [0], [0]>} : vector<2x8x8xbf16>, vector<2x8x64xbf16>, vector<2x8x64xf32> -> vector<2x8x64xf32>
    "tpu.trace_stop"() : () -> ()
    %69 = tpu.reciprocal %65 {approx = true} : vector<2x8x1xf32> -> vector<2x8x1xf32>
    %70 = vector.broadcast %69 : vector<2x8x1xf32> to vector<2x8x64xf32>
    %71 = arith.mulf %68, %70 : vector<2x8x64xf32>
    %72 = vector.shape_cast %71 : vector<2x8x64xf32> to vector<16x64xf32>
    %73 = tpu.concatenate %49, %72 in 1 : vector<16x64xf32>, vector<16x64xf32> -> vector<16x128xf32>
    %74 = arith.truncf %73 : vector<16x128xf32> to vector<16x128xbf16>
    %c0_21 = arith.constant 0 : index
    %c0_22 = arith.constant 0 : index
    %75 = vector.load %arg5[%c0_21, %c0_22] : memref<128x32xbf16, #tpu.memory_space<vmem>>, vector<128x32xbf16>
    %cst_23 = arith.constant dense<0.000000e+00> : vector<16x32xf32>
    %76 = tpu.matmul %74, %75, %cst_23 {dimension_numbers = #tpu.dot_dimension_numbers<[1], [0], [0], [1], [0, 0, 1, 1], [], []>} : vector<16x128xbf16>, vector<128x32xbf16>, vector<16x32xf32> -> vector<16x32xf32>
    %c0_24 = arith.constant 0 : index
    %c0_25 = arith.constant 0 : index
    %77 = vector.load %arg6[%c0_24, %c0_25] : memref<1x32xf32, #tpu.memory_space<vmem>>, vector<1x32xf32>
    %78 = vector.broadcast %77 : vector<1x32xf32> to vector<16x32xf32>
    %79 = arith.addf %76, %78 : vector<16x32xf32>
    %80 = vector.shape_cast %79 : vector<16x32xf32> to vector<2x8x32xf32>
    %c0_26 = arith.constant 0 : index
    %c0_27 = arith.constant 0 : index
    %c0_28 = arith.constant 0 : index
    %81 = vector.load %arg7[%c0_26, %c0_27, %c0_28] : memref<2x8x32xf32, #tpu.memory_space<vmem>>, vector<2x8x32xf32>
    tpu.vector_store %arg7[%c0_26, %c0_27, %c0_28], %80 {strides = array<i32>} : memref<2x8x32xf32, #tpu.memory_space<vmem>>, vector<2x8x32xf32>,
    return
  }
  func.func @transform_0(%arg0: i32) -> (i32, i32, i32) {
    %c0_i32 = arith.constant 0 : i32
    %c0_i32_0 = arith.constant 0 : i32
    %c0_i32_1 = arith.constant 0 : i32
    return %arg0, %c0_i32, %c0_i32_0 : i32, i32, i32
  }
  func.func @transform_1(%arg0: i32) -> (i32, i32) {
    %c0_i32 = arith.constant 0 : i32
    %c0_i32_0 = arith.constant 0 : i32
    %c0_i32_1 = arith.constant 0 : i32
    return %c0_i32, %c0_i32_0 : i32, i32
  }
  func.func @transform_2(%arg0: i32) -> (i32, i32) {
    %c0_i32 = arith.constant 0 : i32
    %c0_i32_0 = arith.constant 0 : i32
    %c0_i32_1 = arith.constant 0 : i32
    return %c0_i32, %c0_i32_0 : i32, i32
  }
  func.func @transform_3(%arg0: i32) -> (i32, i32) {
    %c0_i32 = arith.constant 0 : i32
    %c0_i32_0 = arith.constant 0 : i32
    %c0_i32_1 = arith.constant 0 : i32
    return %c0_i32, %c0_i32_0 : i32, i32
  }
  func.func @transform_4(%arg0: i32) -> (i32, i32) {
    %c0_i32 = arith.constant 0 : i32
    %c0_i32_0 = arith.constant 0 : i32
    %c0_i32_1 = arith.constant 0 : i32
    return %c0_i32, %c0_i32_0 : i32, i32
  }
  func.func @transform_5(%arg0: i32) -> (i32, i32) {
    %c0_i32 = arith.constant 0 : i32
    %c0_i32_0 = arith.constant 0 : i32
    %c0_i32_1 = arith.constant 0 : i32
    return %c0_i32, %c0_i32_0 : i32, i32
  }
  func.func @transform_6(%arg0: i32) -> (i32, i32, i32) {
    %c0_i32 = arith.constant 0 : i32
    %c0_i32_0 = arith.constant 0 : i32
    %c0_i32_1 = arith.constant 0 : i32
    return %arg0, %c0_i32, %c0_i32_0 : i32, i32, i32
  }
}

module attributes {stable_mosaic.version = 11 : i64} {
  func.func @_prenorm_attention_kernel(%arg0: i32, %arg1: memref<2x8x32xf32, #tpu.memory_space<vmem>>, %arg2: memref<1x32xf32, #tpu.memory_space<vmem>>, %arg3: memref<1x32xf32, #tpu.memory_space<vmem>>, %arg4: memref<32x384xbf16, #tpu.memory_space<vmem>>, %arg5: memref<128x32xbf16, #tpu.memory_space<vmem>>, %arg6: memref<1x32xf32, #tpu.memory_space<vmem>>, %arg7: memref<2x8x32xf32, #tpu.memory_space<vmem>>) attributes {dimension_semantics = [#tpu.dimension_semantics<parallel>], iteration_bounds = array<i64: 1>, scalar_prefetch = 0 : i64, scratch_operands = 0 : i64, tpu.core_type = #tpu.core_type<tc>, window_params = [{transform_indices = @transform_0, window_bounds = array<i64: 2, 8, 32>}, {pipeline_mode = #tpu.pipeline_mode<synchronous>, transform_indices = @transform_1, window_bounds = array<i64: 1, 32>}, {pipeline_mode = #tpu.pipeline_mode<synchronous>, transform_indices = @transform_2, window_bounds = array<i64: 1, 32>}, {pipeline_mode = #tpu.pipeline_mode<synchronous>, transform_indices = @transform_3, window_bounds = array<i64: 32, 384>}, {pipeline_mode = #tpu.pipeline_mode<synchronous>, transform_indices = @transform_4, window_bounds = array<i64: 128, 32>}, {pipeline_mode = #tpu.pipeline_mode<synchronous>, transform_indices = @transform_5, window_bounds = array<i64: 1, 32>}, {transform_indices = @transform_6, window_bounds = array<i64: 2, 8, 32>}]} {
    %c0 = arith.constant 0 : index
    %c0_0 = arith.constant 0 : index
    %c0_1 = arith.constant 0 : index
    %0 = vector.load %arg1[%c0, %c0_0, %c0_1] : memref<2x8x32xf32, #tpu.memory_space<vmem>>, vector<2x8x32xf32>
    %1 = vector.shape_cast %0 : vector<2x8x32xf32> to vector<16x32xf32>
    %cst = arith.constant dense<0.000000e+00> : vector<16xf32>
    %2 = vector.multi_reduction <add>, %1, %cst [1] : vector<16x32xf32> to vector<16xf32>
    %3 = vector.shape_cast %2 : vector<16xf32> to vector<16x1xf32>
    %cst_2 = arith.constant 3.200000e+01 : f32
    %4 = vector.broadcast %cst_2 : f32 to vector<16x1xf32>
    %5 = arith.divf %3, %4 : vector<16x1xf32>
    %6 = vector.broadcast %5 : vector<16x1xf32> to vector<16x32xf32>
    %7 = arith.subf %1, %6 : vector<16x32xf32>
    %8 = arith.mulf %7, %7 : vector<16x32xf32>
    %cst_3 = arith.constant dense<0.000000e+00> : vector<16xf32>
    %9 = vector.multi_reduction <add>, %8, %cst_3 [1] : vector<16x32xf32> to vector<16xf32>
    %10 = vector.shape_cast %9 : vector<16xf32> to vector<16x1xf32>
    %cst_4 = arith.constant 3.200000e+01 : f32
    %11 = vector.broadcast %cst_4 : f32 to vector<16x1xf32>
    %12 = arith.divf %10, %11 : vector<16x1xf32>
    %cst_5 = arith.constant 9.99999974E-6 : f32
    %13 = vector.broadcast %cst_5 : f32 to vector<16x1xf32>
    %14 = arith.addf %12, %13 : vector<16x1xf32>
    %15 = math.rsqrt %14 : vector<16x1xf32>
    %16 = vector.broadcast %15 : vector<16x1xf32> to vector<16x32xf32>
    %17 = arith.mulf %7, %16 : vector<16x32xf32>
    %c0_6 = arith.constant 0 : index
    %c0_7 = arith.constant 0 : index
    %18 = vector.load %arg2[%c0_6, %c0_7] : memref<1x32xf32, #tpu.memory_space<vmem>>, vector<1x32xf32>
    %19 = vector.broadcast %18 : vector<1x32xf32> to vector<16x32xf32>
    %20 = arith.mulf %17, %19 : vector<16x32xf32>
    %c0_8 = arith.constant 0 : index
    %c0_9 = arith.constant 0 : index
    %21 = vector.load %arg3[%c0_8, %c0_9] : memref<1x32xf32, #tpu.memory_space<vmem>>, vector<1x32xf32>
    %22 = vector.broadcast %21 : vector<1x32xf32> to vector<16x32xf32>
    %23 = arith.addf %20, %22 : vector<16x32xf32>
    %24 = arith.truncf %23 : vector<16x32xf32> to vector<16x32xbf16>
    %c0_10 = arith.constant 0 : index
    %c0_11 = arith.constant 0 : index
    %25 = vector.load %arg4[%c0_10, %c0_11] : memref<32x384xbf16, #tpu.memory_space<vmem>>, vector<32x384xbf16>
    %cst_12 = arith.constant dense<0.000000e+00> : vector<16x384xf32>
    %26 = tpu.matmul %24, %25, %cst_12 {dimension_numbers = #tpu.dot_dimension_numbers<[1], [0], [0], [1], [0, 0, 1, 1], [], []>} : vector<16x32xbf16>, vector<32x384xbf16>, vector<16x384xf32> -> vector<16x384xf32>
    %27 = vector.extract_strided_slice %26 {offsets = [0, 0], sizes = [16, 64], strides = [1, 1]} : vector<16x384xf32> to vector<16x64xf32>
    %28 = vector.shape_cast %27 : vector<16x64xf32> to vector<2x8x64xf32>
    %29 = vector.extract_strided_slice %26 {offsets = [0, 128], sizes = [16, 64], strides = [1, 1]} : vector<16x384xf32> to vector<16x64xf32>
    %30 = vector.shape_cast %29 : vector<16x64xf32> to vector<2x8x64xf32>
    %31 = vector.extract_strided_slice %26 {offsets = [0, 256], sizes = [16, 64], strides = [1, 1]} : vector<16x384xf32> to vector<16x64xf32>
    %32 = vector.shape_cast %31 : vector<16x64xf32> to vector<2x8x64xf32>
    %33 = arith.truncf %28 : vector<2x8x64xf32> to vector<2x8x64xbf16>
    %34 = arith.truncf %30 : vector<2x8x64xf32> to vector<2x8x64xbf16>
    "tpu.trace_start"() <{level = 10 : i32, message = "bnd,bmd->bnm"}> : () -> ()
    %cst_13 = arith.constant dense<0.000000e+00> : vector<2x8x8xf32>
    %35 = tpu.matmul %33, %34, %cst_13 {dimension_numbers = #tpu.dot_dimension_numbers<[2], [2], [1], [1], [0, 0, 0, 1, 1, 1], [0], [0]>} : vector<2x8x64xbf16>, vector<2x8x64xbf16>, vector<2x8x8xf32> -> vector<2x8x8xf32>
    "tpu.trace_stop"() : () -> ()
    %cst_14 = arith.constant dense<0xFF800000> : vector<2x8xf32>
    %36 = vector.multi_reduction <maximumf>, %35, %cst_14 [2] : vector<2x8x8xf32> to vector<2x8xf32>
    %37 = vector.shape_cast %36 : vector<2x8xf32> to vector<2x8x1xf32>
    %38 = vector.broadcast %37 : vector<2x8x1xf32> to vector<2x8x8xf32>
    %39 = arith.subf %35, %38 : vector<2x8x8xf32>
    %40 = math.exp %39 : vector<2x8x8xf32>
    %cst_15 = arith.constant dense<0.000000e+00> : vector<2x8xf32>
    %41 = vector.multi_reduction <add>, %40, %cst_15 [2] : vector<2x8x8xf32> to vector<2x8xf32>
    %42 = vector.shape_cast %41 : vector<2x8xf32> to vector<2x8x1xf32>
    %43 = arith.truncf %40 : vector<2x8x8xf32> to vector<2x8x8xbf16>
    %44 = arith.truncf %32 : vector<2x8x64xf32> to vector<2x8x64xbf16>
    "tpu.trace_start"() <{level = 10 : i32, message = "bnm,bmd->bnd"}> : () -> ()
    %cst_16 = arith.constant dense<0.000000e+00> : vector<2x8x64xf32>
    %45 = tpu.matmul %43, %44, %cst_16 {dimension_numbers = #tpu.dot_dimension_numbers<[2], [1], [1], [2], [0, 0, 0, 1, 1, 2], [0], [0]>} : vector<2x8x8xbf16>, vector<2x8x64xbf16>, vector<2x8x64xf32> -> vector<2x8x64xf32>
    "tpu.trace_stop"() : () -> ()
    %46 = tpu.reciprocal %42 {approx = true} : vector<2x8x1xf32> -> vector<2x8x1xf32>
    %47 = vector.broadcast %46 : vector<2x8x1xf32> to vector<2x8x64xf32>
    %48 = arith.mulf %45, %47 : vector<2x8x64xf32>
    %49 = vector.shape_cast %48 : vector<2x8x64xf32> to vector<16x64xf32>
    %50 = vector.extract_strided_slice %26 {offsets = [0, 64], sizes = [16, 64], strides = [1, 1]} : vector<16x384xf32> to vector<16x64xf32>
    %51 = vector.shape_cast %50 : vector<16x64xf32> to vector<2x8x64xf32>
    %52 = vector.extract_strided_slice %26 {offsets = [0, 192], sizes = [16, 64], strides = [1, 1]} : vector<16x384xf32> to vector<16x64xf32>
    %53 = vector.shape_cast %52 : vector<16x64xf32> to vector<2x8x64xf32>
    %54 = vector.extract_strided_slice %26 {offsets = [0, 320], sizes = [16, 64], strides = [1, 1]} : vector<16x384xf32> to vector<16x64xf32>
    %55 = vector.shape_cast %54 : vector<16x64xf32> to vector<2x8x64xf32>
    %56 = arith.truncf %51 : vector<2x8x64xf32> to vector<2x8x64xbf16>
    %57 = arith.truncf %53 : vector<2x8x64xf32> to vector<2x8x64xbf16>
    "tpu.trace_start"() <{level = 10 : i32, message = "bnd,bmd->bnm"}> : () -> ()
    %cst_17 = arith.constant dense<0.000000e+00> : vector<2x8x8xf32>
    %58 = tpu.matmul %56, %57, %cst_17 {dimension_numbers = #tpu.dot_dimension_numbers<[2], [2], [1], [1], [0, 0, 0, 1, 1, 1], [0], [0]>} : vector<2x8x64xbf16>, vector<2x8x64xbf16>, vector<2x8x8xf32> -> vector<2x8x8xf32>
    "tpu.trace_stop"() : () -> ()
    %cst_18 = arith.constant dense<0xFF800000> : vector<2x8xf32>
    %59 = vector.multi_reduction <maximumf>, %58, %cst_18 [2] : vector<2x8x8xf32> to vector<2x8xf32>
    %60 = vector.shape_cast %59 : vector<2x8xf32> to vector<2x8x1xf32>
    %61 = vector.broadcast %60 : vector<2x8x1xf32> to vector<2x8x8xf32>
    %62 = arith.subf %58, %61 : vector<2x8x8xf32>
    %63 = math.exp %62 : vector<2x8x8xf32>
    %cst_19 = arith.constant dense<0.000000e+00> : vector<2x8xf32>
    %64 = vector.multi_reduction <add>, %63, %cst_19 [2] : vector<2x8x8xf32> to vector<2x8xf32>
    %65 = vector.shape_cast %64 : vector<2x8xf32> to vector<2x8x1xf32>
    %66 = arith.truncf %63 : vector<2x8x8xf32> to vector<2x8x8xbf16>
    %67 = arith.truncf %55 : vector<2x8x64xf32> to vector<2x8x64xbf16>
    "tpu.trace_start"() <{level = 10 : i32, message = "bnm,bmd->bnd"}> : () -> ()
    %cst_20 = arith.constant dense<0.000000e+00> : vector<2x8x64xf32>
    %68 = tpu.matmul %66, %67, %cst_20 {dimension_numbers = #tpu.dot_dimension_numbers<[2], [1], [1], [2], [0, 0, 0, 1, 1, 2], [0], [0]>} : vector<2x8x8xbf16>, vector<2x8x64xbf16>, vector<2x8x64xf32> -> vector<2x8x64xf32>
    "tpu.trace_stop"() : () -> ()
    %69 = tpu.reciprocal %65 {approx = true} : vector<2x8x1xf32> -> vector<2x8x1xf32>
    %70 = vector.broadcast %69 : vector<2x8x1xf32> to vector<2x8x64xf32>
    %71 = arith.mulf %68, %70 : vector<2x8x64xf32>
    %72 = vector.shape_cast %71 : vector<2x8x64xf32> to vector<16x64xf32>
    %73 = tpu.concatenate %49, %72 in 1 : vector<16x64xf32>, vector<16x64xf32> -> vector<16x128xf32>
    %74 = arith.truncf %73 : vector<16x128xf32> to vector<16x128xbf16>
    %c0_21 = arith.constant 0 : index
    %c0_22 = arith.constant 0 : index
    %75 = vector.load %arg5[%c0_21, %c0_22] : memref<128x32xbf16, #tpu.memory_space<vmem>>, vector<128x32xbf16>
    %cst_23 = arith.constant dense<0.000000e+00> : vector<16x32xf32>
    %76 = tpu.matmul %74, %75, %cst_23 {dimension_numbers = #tpu.dot_dimension_numbers<[1], [0], [0], [1], [0, 0, 1, 1], [], []>} : vector<16x128xbf16>, vector<128x32xbf16>, vector<16x32xf32> -> vector<16x32xf32>
    %c0_24 = arith.constant 0 : index
    %c0_25 = arith.constant 0 : index
    %77 = vector.load %arg6[%c0_24, %c0_25] : memref<1x32xf32, #tpu.memory_space<vmem>>, vector<1x32xf32>
    %78 = vector.broadcast %77 : vector<1x32xf32> to vector<16x32xf32>
    %79 = arith.addf %76, %78 : vector<16x32xf32>
    %80 = vector.shape_cast %79 : vector<16x32xf32> to vector<2x8x32xf32>
    %c0_26 = arith.constant 0 : index
    %c0_27 = arith.constant 0 : index
    %c0_28 = arith.constant 0 : index
    %81 = vector.load %arg7[%c0_26, %c0_27, %c0_28] : memref<2x8x32xf32, #tpu.memory_space<vmem>>, vector<2x8x32xf32>
    tpu.vector_store %arg7[%c0_26, %c0_27, %c0_28], %80 {strides = array<i32>} : memref<2x8x32xf32, #tpu.memory_space<vmem>>, vector<2x8x32xf32>,
    return
  }
  func.func @transform_0(%arg0: i32) -> (i32, i32, i32) {
    %c0_i32 = arith.constant 0 : i32
    %c0_i32_0 = arith.constant 0 : i32
    %c0_i32_1 = arith.constant 0 : i32
    return %arg0, %c0_i32, %c0_i32_0 : i32, i32, i32
  }
  func.func @transform_1(%arg0: i32) -> (i32, i32) {
    %c0_i32 = arith.constant 0 : i32
    %c0_i32_0 = arith.constant 0 : i32
    %c0_i32_1 = arith.constant 0 : i32
    return %c0_i32, %c0_i32_0 : i32, i32
  }
  func.func @transform_2(%arg0: i32) -> (i32, i32) {
    %c0_i32 = arith.constant 0 : i32
    %c0_i32_0 = arith.constant 0 : i32
    %c0_i32_1 = arith.constant 0 : i32
    return %c0_i32, %c0_i32_0 : i32, i32
  }
  func.func @transform_3(%arg0: i32) -> (i32, i32) {
    %c0_i32 = arith.constant 0 : i32
    %c0_i32_0 = arith.constant 0 : i32
    %c0_i32_1 = arith.constant 0 : i32
    return %c0_i32, %c0_i32_0 : i32, i32
  }
  func.func @transform_4(%arg0: i32) -> (i32, i32) {
    %c0_i32 = arith.constant 0 : i32
    %c0_i32_0 = arith.constant 0 : i32
    %c0_i32_1 = arith.constant 0 : i32
    return %c0_i32, %c0_i32_0 : i32, i32
  }
  func.func @transform_5(%arg0: i32) -> (i32, i32) {
    %c0_i32 = arith.constant 0 : i32
    %c0_i32_0 = arith.constant 0 : i32
    %c0_i32_1 = arith.constant 0 : i32
    return %c0_i32, %c0_i32_0 : i32, i32
  }
  func.func @transform_6(%arg0: i32) -> (i32, i32, i32) {
    %c0_i32 = arith.constant 0 : i32
    %c0_i32_0 = arith.constant 0 : i32
    %c0_i32_1 = arith.constant 0 : i32
    return %arg0, %c0_i32, %c0_i32_0 : i32, i32, i32
  }
}

</mosaic_0001>

<bundles_post_ra>
// kernel: tpu_custom_call.1
= control target key start
LH: loop header
LB: loop body
LE: loop exit
PB: predicated region body
PF: predicated region fallthrough
CT: control target
= control target key end

     0   :  { %vm27_vm0 = vcmask 261120   ;;  %s1197_s0 = inlined_call_operand.vmem [shape: f32[2,8,32], index: 0, kind: input, shape index: {}]   ;;  %s1198_s1 = inlined_call_operand.vmem [shape: f32[1,32], index: 1, kind: input, shape index: {}]   ;;  %s1199_s2 = inlined_call_operand.vmem [shape: f32[1,32], index: 2, kind: input, shape index: {}]   ;;  %s1200_s3 = inlined_call_operand.vmem [shape: bf16[32,384], index: 3, kind: input, shape index: {}]   ;;  %s1201_s4 = inlined_call_operand.vmem [shape: bf16[128,32], index: 4, kind: input, shape index: {}]   ;;  %s1202_s5 = inlined_call_operand.vmem [shape: f32[1,32], index: 5, kind: input, shape index: {}]   ;;  %s1203_s6 = inlined_call_operand.hbm [shape: f32[2,8,32], index: 6, kind: output, shape index: {}]  }
   0x1   :  { %v25_v0 = vld [vmem:[%s1197_s0] sm:$0xff]  ;;  %v26_v1 = vld [vmem:[%s1197_s0 + $0x8] sm:$0xff] }
   0x2   :  { %v28_v2 = vsel %vm27_vm0, %v25_v0, 0.0  ;;  %v31_v3 = vsel %vm27_vm0, %v26_v1, 0.0 }
   0x3   :  { %29 = vadd.xlane.f32.xlu0 %v28_v2 }
   0x7   :  { %32 = vadd.xlane.f32.xlu0 %v31_v3 }
   0x8   :  { %11 = vsyncpa [#allocation3], 0  ;;  %v928_v14 = vld [vmem:[%s1200_s3 + $0x4] ss:$12 sps:$4 sm:$0xff]   ;;  %v930_v15 = vld [vmem:[%s1200_s3] ss:$12 sps:$4 sm:$0xff]  }
   0x9   :  { %117 = vmatprep.subr.bf16.mxu1 %v928_v14  ;;  %v931_v16 = vld [vmem:[%s1200_s3 + $0x1c] ss:$12 sps:$4 sm:$0xff]   ;;  %v933_v17 = vld [vmem:[%s1200_s3 + $0x18] ss:$12 sps:$4 sm:$0xff]   ;;  %v988_v18 = vmov 0   ;;  %v989_v19 = vmov 0.0  }
   0xa   :  { %118 = vmatpush1.bf16.msra.mxu1 %v930_v15  ;;  %149 = vmatprep.mubr.bf16.mxu1 %v988_v18  ;;  %vm990_vm1 = vmmov 0   ;;  %v785_v28 = vld [vmem:[%s1198_s1] ss:$0 sm:$0xff]  ;;  %v934_v36 = vld [vmem:[%s1200_s3 + $0x8] ss:$12 sps:$4 sm:$0xff]   ;;  %vm205_vm2 = vcmask 523264  }
   0xb   :  { %119 = vmatprep.subr.bf16.mxu1 %v931_v16  ;;  %860 = vmatprep.subr.bf16.mxu0 %v989_v19  ;;  %v786_v32 = vld [vmem:[%s1199_s2] ss:$0 sm:$0xff]  ;;  %s991_s2 = smov 64   ;;  %vm324_vm3 = vcmask 1043456   ;;  %vm298_vm4 = vcmask 64512   ;;  %s992_s30 = smov [#allocation2]  }
   0xc   :  { %862 = vmatprep.mubr.msk.bf16.mxu0 %vm990_vm1, %v989_v19  ;;  %v935_v38 = vld [vmem:[%s1200_s3 + $0x20] ss:$12 sps:$4 sm:$0xff]   ;;  %s774_s7 = sshll.u32 %s992_s30, 4  ;;  %s775_s7 = int_to_ptr.vmem [resolvable:$true] %s774_s7 }
   0xd   :  { %s964_s8 = scalar_lea.vmem %s775_s7, 256  ;;  %p969_p1 = scmp.lt.s32.totalorder %s775_s7, %s775_s7 }
   0xe   :  { %120 = vmatpush1.bf16.msra.mxu1 %v933_v17  ;;  %p965_p0 = scmp.ne.s32.totalorder %s775_s7, %s964_s8  ;;  %p970_p2 = scmp.lt.s32.totalorder %s964_s8, %s964_s8 }
   0xf   :  { %840 = vmatprep.subr.bf16.mxu1 %v989_v19 }
  0x10   :  { %p971_p3 = por %p970_p2, %p969_p1 }
  0x12   :  { %p972_p4 = pnand %p971_p3, %p965_p0 }
  0x90   :  { %v30_v4 = vpop.xlane.xlu0 %29 }
  0x91   :  { %v35_v5 = vmul.f32 0.03125, %v30_v4 }
  0x93   :  { %v37_v6 = vsub.f32 %v25_v0, %v35_v5 }
  0x94   :  { %v33_v7 = vpop.xlane.xlu0 %32 }
  0x95   :  { %v36_v8 = vmul.f32 0.03125, %v33_v7  ;;  %v39_v9 = vmul.f32 %v37_v6, %v37_v6 }
  0x97   :  { %v38_v10 = vsub.f32 %v26_v1, %v36_v8  ;;  %v41_v11 = vsel %vm27_vm0, %v39_v9, 0.0 }
  0x98   :  { %42 = vadd.xlane.f32.xlu1 %v41_v11 }
  0x99   :  { %v40_v12 = vmul.f32 %v38_v10, %v38_v10 }
  0x9b   :  { %v44_v13 = vsel %vm27_vm0, %v40_v12, 0.0 }
  0x9c   :  { %45 = vadd.xlane.f32.xlu1 %v44_v13 }
 0x125   :  { %v43_v20 = vpop.xlane.xlu1 %42 }
 0x126   :  { %v47_v21 = vmul.f32 0.03125, %v43_v20 }
 0x128   :  { %v49_v22 = vadd.f32 1e-05, %v47_v21 }
 0x129   :  { %v46_v23 = vpop.xlane.xlu1 %45 }
 0x12a   :  { %944 = vrsqrt.f32 %v49_v22  ;;  %v48_v24 = vmul.f32 0.03125, %v46_v23 }
 0x12c   :  { %v50_v25 = vadd.f32 1e-05, %v48_v24 }
 0x12e   :  { %946 = vrsqrt.f32 %v50_v25 }
 0x134   :  { %v945_v26 = vpop.eup %944 }
 0x135   :  { %v53_v27 = vmul.f32 %v945_v26, %v37_v6 }
 0x137   :  { %v62_v31 = vmul.f32 %v785_v28, %v53_v27 }
 0x138   :  { %v947_v29 = vpop.eup %946 }
 0x139   :  { %v54_v30 = vmul.f32 %v947_v29, %v38_v10  ;;  %v71_v34 = vadd.f32 %v786_v32, %v62_v31 }
 0x13b   :  { %v63_v33 = vmul.f32 %v785_v28, %v54_v30 }
 0x13d   :  { %v72_v35 = vadd.f32 %v786_v32, %v63_v33 }
 0x13f   :  { %v73_v37 = vpack.c.bf16 %v72_v35, %v71_v34 }
 0x141   :  { %793 = vmatmul.mubr.msk.bf16.vlgmr.msra.gmra.mrb[0].mxu1 %vm27_vm0, %v73_v37 }
 0x142   :  { %841 = vmatpush3.bf16.msra.mxu1 %v934_v36  ;;  %844 = vmatprep.mubr.msk.bf16.mxu1 %vm990_vm1, %v989_v19 }
 0x143   :  { %842 = vmatprep.subr.bf16.mxu1 %v989_v19 }
 0x146   :  { %843 = vmatpush3.bf16.msra.mxu1 %v935_v38 }
 0x147   :  { %848 = vmatprep.subr.bf16.mxu1 %v989_v19 }
 0x149   :  { %845 = vmatmul.mubr.msk.bf16.vlgmr.msra.gmra.mrb[4].mxu1 %vm27_vm0, %v73_v37 }
 0x14a   :  { %850 = vmatprep.mubr.msk.bf16.mxu1 %vm990_vm1, %v989_v19 }
 0x214   :  { %v151_v39 = vpop.f32.mrb[0].mxu1 }
 0x215   :  { %v153_v40 = vpop.f32.mrb[1].mxu1  ;;  %v201_v49 = vpack.c.bf16 %v151_v39, %v151_v39 }
 0x216   :  { %v203_v41 = vpack.c.bf16 %v153_v40, %v153_v40  ;;  %v155_v42 = vpop.f32.mrb[2].mxu1 }
 0x217   :  { %v157_v43 = vpop.f32.mrb[3].mxu1  ;;  %v202_v55 = vpack.c.bf16 %v155_v42, %v155_v42 }
 0x218   :  { %v210_v44 = vsel %vm205_vm2, %v203_v41, 0  ;;  %v204_v45 = vpack.c.bf16 %v157_v43, %v157_v43 }
 0x219   :  { %849 = vmatpush3.bf16.xpose.msra.mxu1 %v210_v44 }
 0x21a   :  { %474 = vrot.lane.b32.xlu1 %v204_v45, %s991_s2  ;;  %854 = vmatprep.subr.bf16.mxu1 %v989_v19  ;;  %v256_v53 = vsel %vm205_vm2, %v204_v45, 0 }
 0x21c   :  { %v194_v46 = vpop.f32.mrb[4].mxu1 }
 0x21d   :  { %v1079_v47 = vpack.c.bf16 %v194_v46, %v194_v46  ;;  %v846_v48 = vpop.f32.mrb[5].mxu1 }
 0x21e   :  { %v197_v50 = vpop.f32.mrb[6].mxu1 }
 0x21f   :  { %v847_v51 = vpop.f32.mrb[7].mxu1  ;;  %v326_v52 = vsel %vm324_vm3, %v1079_v47, 0  ;;  %v1089_v54 = vpack.c.bf16 %v197_v50, %v197_v50 }
 0x220   :  { %851 = vmatmul.mubr.msk.bf16.vlgmr.msra.gmra.mrb[8].mxu1 %vm205_vm2, %v201_v49  ;;  %861 = vmatpush3.bf16.msra.mxu0 %v326_v52 }
 0x221   :  { %855 = vmatpush3.bf16.xpose.msra.mxu1 %v256_v53  ;;  %856 = vmatprep.mubr.msk.bf16.mxu1 %vm990_vm1, %v989_v19  ;;  %v372_v56 = vsel %vm324_vm3, %v1089_v54, 0 }
 0x222   :  { %866 = vmatprep.subr.bf16.mxu1 %v989_v19  ;;  %872 = vmatprep.subr.bf16.mxu0 %v989_v19 }
 0x228   :  { %857 = vmatmul.mubr.msk.bf16.vlgmr.msra.gmra.mrb[12].mxu1 %vm205_vm2, %v202_v55 }
 0x229   :  { %867 = vmatpush3.bf16.msra.mxu1 %v372_v56  ;;  %868 = vmatprep.mubr.msk.bf16.mxu1 %vm990_vm1, %v989_v19  ;;  %v936_v56 = vld [vmem:[%s1201_s4] sm:$0xff]  }
 0x22a   :  { %878 = vmatprep.subr.bf16.mxu1 %v989_v19 }
 0x28c   :  { %v475_v6 = vpop.permute.xlu1 %474 }
 0x28d   :  { %v480_v17 = vsel %vm205_vm2, %v475_v6, 0 }
 0x2f3   :  { %v246_v57 = vpop.f32.mrb[8].mxu1 }
 0x2f4   :  { %v852_v58 = vpop.f32.mrb[9].mxu1  ;;  %v299_v59 = vsel %vm298_vm4, %v246_v57, -inf }
 0x2f5   :  { %300 = vmax.xlane.f32.xlu0 %v299_v59  ;;  %v249_v60 = vpop.f32.mrb[10].mxu1  ;;  %v938_v58 = vld [vmem:[%s1201_s4 + $0x10] sm:$0xff]   ;;  %v939_v59 = vld [vmem:[%s1201_s4 + $0x18] sm:$0xff]  }
 0x2f6   :  { %v853_v61 = vpop.f32.mrb[11].mxu1  ;;  %v940_v60 = vld [vmem:[%s1201_s4 + $0x20] sm:$0xff]  }
 0x2f7   :  { %v941_v61 = vld [vmem:[%s1201_s4 + $0x28] sm:$0xff]  }
 0x2fb   :  { %v292_v62 = vpop.f32.mrb[12].mxu1 }
 0x2fc   :  { %v858_v63 = vpop.f32.mrb[13].mxu1  ;;  %v302_v0 = vsel %vm298_vm4, %v292_v62, -inf }
 0x2fd   :  { %303 = vmax.xlane.f32.xlu1 %v302_v0  ;;  %v295_v1 = vpop.f32.mrb[14].mxu1 }
 0x2fe   :  { %v859_v2 = vpop.f32.mrb[15].mxu1 }
 0x30b   :  { %422 = vrot.lane.b32.xlu0 %v203_v41, %s991_s2 }
 0x30e   :  { %419 = vrot.lane.b32.xlu1 %v201_v49, %s991_s2 }
 0x312   :  { %471 = vrot.lane.b32.xlu1 %v202_v55, %s991_s2 }
 0x382   :  { %v301_v3 = vpop.xlane.xlu0 %300 }
 0x383   :  { %v305_v4 = vsub.f32 %v246_v57, %v301_v3  ;;  %v937_v57 = vld [vmem:[%s1201_s4 + $0x8] sm:$0xff]   ;;  %v943_v3 = vld [vmem:[%s1201_s4 + $0x38] sm:$0xff]  }
 0x385   :  { %v307_v5 = vmul.f32 1.442695, %v305_v4 }
 0x386   :  { %v423_v11 = vpop.permute.xlu0 %422 }
 0x387   :  { %948 = vpow2.f32 %v307_v5  ;;  %v428_v13 = vsel %vm205_vm2, %v423_v11, 0 }
 0x38a   :  { %v304_v7 = vpop.xlane.xlu1 %303 }
 0x38b   :  { %v306_v8 = vsub.f32 %v292_v62, %v304_v7  ;;  %v942_v62 = vld [vmem:[%s1201_s4 + $0x30] sm:$0xff]  }
 0x38d   :  { %v309_v9 = vmul.f32 1.442695, %v306_v8 }
 0x38e   :  { %v420_v16 = vpop.permute.xlu1 %419 }
 0x38f   :  { %950 = vpow2.f32 %v309_v9 }
 0x391   :  { %v1102_v10 = vpop.eup %948 }
 0x392   :  { %v317_v12 = vpack.c.bf16 %v1102_v10, %v1102_v10  ;;  %v472_v18 = vpop.permute.xlu1 %471  ;;  %v311_v51 = vsel %vm298_vm4, %v1102_v10, 0.0 }
 0x394   :  { %863 = vmatmul.mubr.msk.bf16.vlgmr.msra.gmra.mrb[0].mxu0 %vm298_vm4, %v317_v12 }
 0x395   :  { %873 = vmatpush3.bf16.xpose.msra.mxu0 %v428_v13  ;;  %874 = vmatprep.mubr.msk.bf16.mxu0 %vm990_vm1, %v989_v19 }
 0x396   :  { %884 = vmatprep.subr.bf16.mxu0 %v989_v19 }
 0x399   :  { %v951_v14 = vpop.eup %950 }
 0x39a   :  { %v318_v15 = vpack.c.bf16 %v951_v14, %v951_v14  ;;  %v314_v53 = vsel %vm298_vm4, %v951_v14, 0.0 }
 0x39c   :  { %869 = vmatmul.mubr.msk.bf16.vlgmr.msra.gmra.mrb[16].mxu1 %vm298_vm4, %v318_v15  ;;  %875 = vmatmul.mubr.msk.bf16.vlgmr.msra.gmra.mrb[4].mxu0 %vm205_vm2, %v420_v16 }
 0x39d   :  { %879 = vmatpush3.bf16.xpose.msra.mxu1 %v480_v17  ;;  %880 = vmatprep.mubr.msk.bf16.mxu1 %vm990_vm1, %v989_v19 }
 0x39e   :  { %890 = vmatprep.subr.bf16.mxu1 %v989_v19  ;;  %886 = vmatprep.mubr.msk.bf16.mxu0 %vm990_vm1, %v989_v19 }
 0x3a4   :  { %881 = vmatmul.mubr.msk.bf16.vlgmr.msra.gmra.mrb[20].mxu1 %vm205_vm2, %v472_v18 }
 0x3a5   :  { %892 = vmatprep.mubr.msk.bf16.mxu1 %vm990_vm1, %v989_v19 }
 0x467   :  { %v1122_v20 = vpop.f32.mrb[0].mxu0 }
 0x468   :  { %v864_v21 = vpop.f32.mrb[1].mxu0 }
 0x469   :  { %v365_v22 = vpop.f32.mrb[2].mxu0 }
 0x46a   :  { %v865_v23 = vpop.f32.mrb[3].mxu0 }
 0x46f   :  { %v1124_v24 = vpop.f32.mrb[16].mxu1  ;;  %v464_v25 = vpop.f32.mrb[4].mxu0 }
 0x470   :  { %v870_v26 = vpop.f32.mrb[17].mxu1  ;;  %v876_v27 = vpop.f32.mrb[5].mxu0  ;;  %v522_v28 = vsel %vm298_vm4, %v464_v25, -inf }
 0x471   :  { %523 = vmax.xlane.f32.xlu0 %v522_v28  ;;  %v411_v29 = vpop.f32.mrb[18].mxu1  ;;  %v467_v30 = vpop.f32.mrb[6].mxu0 }
 0x472   :  { %v871_v31 = vpop.f32.mrb[19].mxu1  ;;  %v877_v32 = vpop.f32.mrb[7].mxu0  ;;  %v803_v29 = vld [vmem:[%s1202_s5] ss:$0 sm:$0xff] }
 0x477   :  { %v516_v33 = vpop.f32.mrb[20].mxu1 }
 0x478   :  { %v882_v34 = vpop.f32.mrb[21].mxu1  ;;  %v525_v35 = vsel %vm298_vm4, %v516_v33, -inf }
 0x479   :  { %526 = vmax.xlane.f32.xlu1 %v525_v35  ;;  %v519_v36 = vpop.f32.mrb[22].mxu1 }
 0x47a   :  { %v883_v37 = vpop.f32.mrb[23].mxu1 }
 0x487   :  { %543 = vrot.lane.b32.xlu0 %v1079_v47, %s991_s2 }
 0x48a   :  { %592 = vrot.lane.b32.xlu1 %v1089_v54, %s991_s2 }
 0x4fe   :  { %v524_v38 = vpop.xlane.xlu0 %523 }
 0x4ff   :  { %v528_v39 = vsub.f32 %v464_v25, %v524_v38 }
 0x501   :  { %v530_v40 = vmul.f32 1.442695, %v528_v39 }
 0x502   :  { %v544_v41 = vpop.permute.xlu0 %543 }
 0x503   :  { %952 = vpow2.f32 %v530_v40  ;;  %v549_v42 = vsel %vm324_vm3, %v544_v41, 0 }
 0x504   :  { %885 = vmatpush3.bf16.msra.mxu0 %v549_v42 }
 0x505   :  { %896 = vmatprep.subr.bf16.mxu0 %v989_v19 }
 0x506   :  { %v527_v43 = vpop.xlane.xlu1 %526 }
 0x507   :  { %v529_v44 = vsub.f32 %v516_v33, %v527_v43 }
 0x509   :  { %v532_v45 = vmul.f32 1.442695, %v529_v44 }
 0x50a   :  { %v593_v46 = vpop.permute.xlu1 %592 }
 0x50b   :  { %954 = vpow2.f32 %v532_v45  ;;  %v598_v47 = vsel %vm324_vm3, %v593_v46, 0 }
 0x50c   :  { %891 = vmatpush3.bf16.msra.mxu1 %v598_v47 }
 0x50d   :  { %v953_v48 = vpop.eup %952 }
 0x50e   :  { %v534_v49 = vsel %vm298_vm4, %v953_v48, 0.0  ;;  %v540_v50 = vpack.c.bf16 %v953_v48, %v953_v48 }
 0x50f   :  { %535 = vadd.xlane.f32.xlu0 %v534_v49 }
 0x510   :  { %887 = vmatmul.mubr.msk.bf16.vlgmr.msra.gmra.mrb[8].mxu0 %vm298_vm4, %v540_v50 }
 0x511   :  { %912 = vmatprep.mubr.msk.bf16.mxu0 %vm990_vm1, %v989_v19  ;;  %897 = vmatpush3.bf16.msra.mxu0 %v936_v56 }
 0x512   :  { %898 = vmatprep.subr.bf16.mxu0 %v989_v19 }
 0x513   :  { %312 = vadd.xlane.f32.xlu0 %v311_v51 }
 0x515   :  { %v955_v52 = vpop.eup %954  ;;  %899 = vmatpush3.bf16.msra.mxu0 %v937_v57 }
 0x516   :  { %v537_v54 = vsel %vm298_vm4, %v955_v52, 0.0  ;;  %v541_v55 = vpack.c.bf16 %v955_v52, %v955_v52  ;;  %900 = vmatprep.subr.bf16.mxu0 %v989_v19 }
 0x517   :  { %315 = vadd.xlane.f32.xlu0 %v314_v53  ;;  %538 = vadd.xlane.f32.xlu1 %v537_v54 }
 0x518   :  { %893 = vmatmul.mubr.msk.bf16.vlgmr.msra.gmra.mrb[24].mxu1 %vm298_vm4, %v541_v55 }
 0x519   :  { %901 = vmatpush3.bf16.msra.mxu0 %v938_v58 }
 0x51a   :  { %902 = vmatprep.subr.bf16.mxu0 %v989_v19 }
 0x51d   :  { %903 = vmatpush3.bf16.msra.mxu0 %v939_v59 }
 0x51e   :  { %904 = vmatprep.subr.bf16.mxu0 %v989_v19 }
 0x521   :  { %905 = vmatpush3.bf16.msra.mxu0 %v940_v60 }
 0x522   :  { %906 = vmatprep.subr.bf16.mxu0 %v989_v19 }
 0x525   :  { %907 = vmatpush3.bf16.msra.mxu0 %v941_v61 }
 0x526   :  { %908 = vmatprep.subr.bf16.mxu0 %v989_v19 }
 0x529   :  { %909 = vmatpush3.bf16.msra.mxu0 %v942_v62 }
 0x52a   :  { %910 = vmatprep.subr.bf16.mxu0 %v989_v19 }
 0x52d   :  { %911 = vmatpush3.bf16.msra.mxu0 %v943_v3 }
 0x59c   :  { %v536_v63 = vpop.xlane.xlu0 %535 }
 0x59d   :  { %956 = vrcp.f32 %v536_v63 }
 0x5a0   :  { %v313_v14 = vpop.xlane.xlu0 %312 }
 0x5a4   :  { %v539_v0 = vpop.xlane.xlu1 %538  ;;  %v316_v15 = vpop.xlane.xlu0 %315 }
 0x5a5   :  { %958 = vrcp.f32 %v539_v0 }
 0x5a6   :  { %960 = vrcp.f32 %v313_v14 }
 0x5a7   :  { %v957_v6 = vpop.eup %956  ;;  %962 = vrcp.f32 %v316_v15 }
 0x5af   :  { %v959_v7 = vpop.eup %958 }
 0x5b0   :  { %v961_v16 = vpop.eup %960 }
 0x5b1   :  { %v963_v17 = vpop.eup %962  ;;  %v416_v21 = vmul.f32 %v961_v16, %v1122_v20 }
 0x5b2   :  { %v417_v22 = vmul.f32 %v963_v17, %v1124_v24 }
 0x5e3   :  { %v585_v1 = vpop.f32.mrb[8].mxu0 }
 0x5e4   :  { %v888_v2 = vpop.f32.mrb[9].mxu0  ;;  %v642_v9 = vmul.f32 %v957_v6, %v585_v1 }
 0x5e5   :  { %v588_v4 = vpop.f32.mrb[10].mxu0 }
 0x5e6   :  { %v889_v5 = vpop.f32.mrb[11].mxu0 }
 0x5eb   :  { %v634_v8 = vpop.f32.mrb[24].mxu1 }
 0x5ec   :  { %v643_v10 = vmul.f32 %v959_v7, %v634_v8  ;;  %v894_v11 = vpop.f32.mrb[25].mxu1 }
 0x5ed   :  { %v637_v19 = vpop.f32.mrb[26].mxu1 }
 0x5ee   :  { %v923_v12 = vpack.i.bf16 %v643_v10, %v642_v9  ;;  %v895_v13 = vpop.f32.mrb[27].mxu1 }
 0x5f0   :  { %924 = vrot.lane.b32.xlu0 %v923_v12, %s991_s2 }
 0x662   :  { %v925_v18 = vpop.permute.xlu0 %924 }
 0x663   :  { %v927_v23 = vunpack.i.h.bf16 %v925_v18  ;;  %v926_v25 = vunpack.i.l.bf16 %v925_v18 }
 0x665   :  { %v653_v26 = vsel %vm205_vm2, %v417_v22, %v927_v23  ;;  %v652_v27 = vsel %vm205_vm2, %v416_v21, %v926_v25 }
 0x666   :  { %v654_v28 = vpack.c.bf16 %v653_v26, %v652_v27 }
 0x668   :  { %913 = vmatmul.mubr.bf16.vlgmr.msra.gmra.mrb[12].mxu0 %v654_v28 }
 0x73b   :  { %v760_v30 = vpop.f32.mrb[12].mxu0 }
 0x73c   :  { %v761_v31 = vadd.f32 %v803_v29, %v760_v30  ;;  %v914_v32 = vpop.f32.mrb[13].mxu0 }
 0x73d   :  { %v763_v20 = vpop.f32.mrb[14].mxu0 }
 0x73e   :  { %767 = vst.msk [vmem:[#allocation2] sm:$0xff] %vm27_vm0, %v761_v31  ;;  %v764_v24 = vadd.f32 %v803_v29, %v763_v20  ;;  %v915_v33 = vpop.f32.mrb[15].mxu0 }
 0x740   :  { %768 = vst.msk [vmem:[#allocation2 + $0x8] sm:$0xff] %vm27_vm0, %v764_v24 }
 0x741   :  { %975 = shalt.err (!%p972_p4)
}
 0x742   :  { %s976_s10 = scalar_lea.hbm %s1203_s6, 256 }
 0x743   :  { %p977_p5 = scmp.ne.s32.totalorder %s1203_s6, %s976_s10  ;;  %p980_p6 = scmp.lt.u32.totalorder %s976_s10, %s1203_s6 }
 0x745   :  { %p982_p7 = pnand %p980_p6, %p977_p5 }
 0x747   :  { %985 = shalt.err (!%p982_p7)
}
 0x748   :  { %s993_s1 = smov 128   ;;  %s994_s2 = smov 8  }
 0x749   :  { %780 = dma.vmem_to_hbm [thread:$0]  %s775_s7, 256, %s1203_s6, [#allocation3], %s993_s1, %s993_s1, %s994_s2  }
 0x74a   :  { %986 = dma.done.wait [#allocation3], 256  }
 0x74b   :  { %987 = vsyncadd [#allocation3], 4294967040 }
 0x74c   :  { %784 = vsyncpa [#allocation3], 1 }

// kernel: tpu_custom_call.1
= control target key start
LH: loop header
LB: loop body
LE: loop exit
PB: predicated region body
PF: predicated region fallthrough
CT: control target
= control target key end

     0   :  { %vm27_vm0 = vcmask 261120   ;;  %s1197_s0 = inlined_call_operand.vmem [shape: f32[2,8,32], index: 0, kind: input, shape index: {}]   ;;  %s1198_s1 = inlined_call_operand.vmem [shape: f32[1,32], index: 1, kind: input, shape index: {}]   ;;  %s1199_s2 = inlined_call_operand.vmem [shape: f32[1,32], index: 2, kind: input, shape index: {}]   ;;  %s1200_s3 = inlined_call_operand.vmem [shape: bf16[32,384], index: 3, kind: input, shape index: {}]   ;;  %s1201_s4 = inlined_call_operand.vmem [shape: bf16[128,32], index: 4, kind: input, shape index: {}]   ;;  %s1202_s5 = inlined_call_operand.vmem [shape: f32[1,32], index: 5, kind: input, shape index: {}]   ;;  %s1203_s6 = inlined_call_operand.hbm [shape: f32[2,8,32], index: 6, kind: output, shape index: {}]  }
   0x1   :  { %v25_v0 = vld [vmem:[%s1197_s0] sm:$0xff]  ;;  %v26_v1 = vld [vmem:[%s1197_s0 + $0x8] sm:$0xff] }
   0x2   :  { %v28_v2 = vsel %vm27_vm0, %v25_v0, 0.0  ;;  %v31_v3 = vsel %vm27_vm0, %v26_v1, 0.0 }
   0x3   :  { %29 = vadd.xlane.f32.xlu0 %v28_v2 }
   0x7   :  { %32 = vadd.xlane.f32.xlu0 %v31_v3 }
   0x8   :  { %11 = vsyncpa [#allocation3], 0  ;;  %v928_v14 = vld [vmem:[%s1200_s3 + $0x4] ss:$12 sps:$4 sm:$0xff]   ;;  %v930_v15 = vld [vmem:[%s1200_s3] ss:$12 sps:$4 sm:$0xff]  }
   0x9   :  { %117 = vmatprep.subr.bf16.mxu1 %v928_v14  ;;  %v931_v16 = vld [vmem:[%s1200_s3 + $0x1c] ss:$12 sps:$4 sm:$0xff]   ;;  %v933_v17 = vld [vmem:[%s1200_s3 + $0x18] ss:$12 sps:$4 sm:$0xff]   ;;  %v988_v18 = vmov 0   ;;  %v989_v19 = vmov 0.0  }
   0xa   :  { %118 = vmatpush1.bf16.msra.mxu1 %v930_v15  ;;  %149 = vmatprep.mubr.bf16.mxu1 %v988_v18  ;;  %vm990_vm1 = vmmov 0   ;;  %v785_v28 = vld [vmem:[%s1198_s1] ss:$0 sm:$0xff]  ;;  %v934_v36 = vld [vmem:[%s1200_s3 + $0x8] ss:$12 sps:$4 sm:$0xff]   ;;  %vm205_vm2 = vcmask 523264  }
   0xb   :  { %119 = vmatprep.subr.bf16.mxu1 %v931_v16  ;;  %860 = vmatprep.subr.bf16.mxu0 %v989_v19  ;;  %v786_v32 = vld [vmem:[%s1199_s2] ss:$0 sm:$0xff]  ;;  %s991_s2 = smov 64   ;;  %vm324_vm3 = vcmask 1043456   ;;  %vm298_vm4 = vcmask 64512   ;;  %s992_s30 = smov [#allocation2]  }
   0xc   :  { %862 = vmatprep.mubr.msk.bf16.mxu0 %vm990_vm1, %v989_v19  ;;  %v935_v38 = vld [vmem:[%s1200_s3 + $0x20] ss:$12 sps:$4 sm:$0xff]   ;;  %s774_s7 = sshll.u32 %s992_s30, 4  ;;  %s775_s7 = int_to_ptr.vmem [resolvable:$true] %s774_s7 }
   0xd   :  { %s964_s8 = scalar_lea.vmem %s775_s7, 256  ;;  %p969_p1 = scmp.lt.s32.totalorder %s775_s7, %s775_s7 }
   0xe   :  { %120 = vmatpush1.bf16.msra.mxu1 %v933_v17  ;;  %p965_p0 = scmp.ne.s32.totalorder %s775_s7, %s964_s8  ;;  %p970_p2 = scmp.lt.s32.totalorder %s964_s8, %s964_s8 }
   0xf   :  { %840 = vmatprep.subr.bf16.mxu1 %v989_v19 }
  0x10   :  { %p971_p3 = por %p970_p2, %p969_p1 }
  0x12   :  { %p972_p4 = pnand %p971_p3, %p965_p0 }
  0x90   :  { %v30_v4 = vpop.xlane.xlu0 %29 }
  0x91   :  { %v35_v5 = vmul.f32 0.03125, %v30_v4 }
  0x93   :  { %v37_v6 = vsub.f32 %v25_v0, %v35_v5 }
  0x94   :  { %v33_v7 = vpop.xlane.xlu0 %32 }
  0x95   :  { %v36_v8 = vmul.f32 0.03125, %v33_v7  ;;  %v39_v9 = vmul.f32 %v37_v6, %v37_v6 }
  0x97   :  { %v38_v10 = vsub.f32 %v26_v1, %v36_v8  ;;  %v41_v11 = vsel %vm27_vm0, %v39_v9, 0.0 }
  0x98   :  { %42 = vadd.xlane.f32.xlu1 %v41_v11 }
  0x99   :  { %v40_v12 = vmul.f32 %v38_v10, %v38_v10 }
  0x9b   :  { %v44_v13 = vsel %vm27_vm0, %v40_v12, 0.0 }
  0x9c   :  { %45 = vadd.xlane.f32.xlu1 %v44_v13 }
 0x125   :  { %v43_v20 = vpop.xlane.xlu1 %42 }
 0x126   :  { %v47_v21 = vmul.f32 0.03125, %v43_v20 }
 0x128   :  { %v49_v22 = vadd.f32 1e-05, %v47_v21 }
 0x129   :  { %v46_v23 = vpop.xlane.xlu1 %45 }
 0x12a   :  { %944 = vrsqrt.f32 %v49_v22  ;;  %v48_v24 = vmul.f32 0.03125, %v46_v23 }
 0x12c   :  { %v50_v25 = vadd.f32 1e-05, %v48_v24 }
 0x12e   :  { %946 = vrsqrt.f32 %v50_v25 }
 0x134   :  { %v945_v26 = vpop.eup %944 }
 0x135   :  { %v53_v27 = vmul.f32 %v945_v26, %v37_v6 }
 0x137   :  { %v62_v31 = vmul.f32 %v785_v28, %v53_v27 }
 0x138   :  { %v947_v29 = vpop.eup %946 }
 0x139   :  { %v54_v30 = vmul.f32 %v947_v29, %v38_v10  ;;  %v71_v34 = vadd.f32 %v786_v32, %v62_v31 }
 0x13b   :  { %v63_v33 = vmul.f32 %v785_v28, %v54_v30 }
 0x13d   :  { %v72_v35 = vadd.f32 %v786_v32, %v63_v33 }
 0x13f   :  { %v73_v37 = vpack.c.bf16 %v72_v35, %v71_v34 }
 0x141   :  { %793 = vmatmul.mubr.msk.bf16.vlgmr.msra.gmra.mrb[0].mxu1 %vm27_vm0, %v73_v37 }
 0x142   :  { %841 = vmatpush3.bf16.msra.mxu1 %v934_v36  ;;  %844 = vmatprep.mubr.msk.bf16.mxu1 %vm990_vm1, %v989_v19 }
 0x143   :  { %842 = vmatprep.subr.bf16.mxu1 %v989_v19 }
 0x146   :  { %843 = vmatpush3.bf16.msra.mxu1 %v935_v38 }
 0x147   :  { %848 = vmatprep.subr.bf16.mxu1 %v989_v19 }
 0x149   :  { %845 = vmatmul.mubr.msk.bf16.vlgmr.msra.gmra.mrb[4].mxu1 %vm27_vm0, %v73_v37 }
 0x14a   :  { %850 = vmatprep.mubr.msk.bf16.mxu1 %vm990_vm1, %v989_v19 }
 0x214   :  { %v151_v39 = vpop.f32.mrb[0].mxu1 }
 0x215   :  { %v153_v40 = vpop.f32.mrb[1].mxu1  ;;  %v201_v49 = vpack.c.bf16 %v151_v39, %v151_v39 }
 0x216   :  { %v203_v41 = vpack.c.bf16 %v153_v40, %v153_v40  ;;  %v155_v42 = vpop.f32.mrb[2].mxu1 }
 0x217   :  { %v157_v43 = vpop.f32.mrb[3].mxu1  ;;  %v202_v55 = vpack.c.bf16 %v155_v42, %v155_v42 }
 0x218   :  { %v210_v44 = vsel %vm205_vm2, %v203_v41, 0  ;;  %v204_v45 = vpack.c.bf16 %v157_v43, %v157_v43 }
 0x219   :  { %849 = vmatpush3.bf16.xpose.msra.mxu1 %v210_v44 }
 0x21a   :  { %474 = vrot.lane.b32.xlu1 %v204_v45, %s991_s2  ;;  %854 = vmatprep.subr.bf16.mxu1 %v989_v19  ;;  %v256_v53 = vsel %vm205_vm2, %v204_v45, 0 }
 0x21c   :  { %v194_v46 = vpop.f32.mrb[4].mxu1 }
 0x21d   :  { %v1079_v47 = vpack.c.bf16 %v194_v46, %v194_v46  ;;  %v846_v48 = vpop.f32.mrb[5].mxu1 }
 0x21e   :  { %v197_v50 = vpop.f32.mrb[6].mxu1 }
 0x21f   :  { %v847_v51 = vpop.f32.mrb[7].mxu1  ;;  %v326_v52 = vsel %vm324_vm3, %v1079_v47, 0  ;;  %v1089_v54 = vpack.c.bf16 %v197_v50, %v197_v50 }
 0x220   :  { %851 = vmatmul.mubr.msk.bf16.vlgmr.msra.gmra.mrb[8].mxu1 %vm205_vm2, %v201_v49  ;;  %861 = vmatpush3.bf16.msra.mxu0 %v326_v52 }
 0x221   :  { %855 = vmatpush3.bf16.xpose.msra.mxu1 %v256_v53  ;;  %856 = vmatprep.mubr.msk.bf16.mxu1 %vm990_vm1, %v989_v19  ;;  %v372_v56 = vsel %vm324_vm3, %v1089_v54, 0 }
 0x222   :  { %866 = vmatprep.subr.bf16.mxu1 %v989_v19  ;;  %872 = vmatprep.subr.bf16.mxu0 %v989_v19 }
 0x228   :  { %857 = vmatmul.mubr.msk.bf16.vlgmr.msra.gmra.mrb[12].mxu1 %vm205_vm2, %v202_v55 }
 0x229   :  { %867 = vmatpush3.bf16.msra.mxu1 %v372_v56  ;;  %868 = vmatprep.mubr.msk.bf16.mxu1 %vm990_vm1, %v989_v19  ;;  %v936_v56 = vld [vmem:[%s1201_s4] sm:$0xff]  }
 0x22a   :  { %878 = vmatprep.subr.bf16.mxu1 %v989_v19 }
 0x28c   :  { %v475_v6 = vpop.permute.xlu1 %474 }
 0x28d   :  { %v480_v17 = vsel %vm205_vm2, %v475_v6, 0 }
 0x2f3   :  { %v246_v57 = vpop.f32.mrb[8].mxu1 }
 0x2f4   :  { %v852_v58 = vpop.f32.mrb[9].mxu1  ;;  %v299_v59 = vsel %vm298_vm4, %v246_v57, -inf }
 0x2f5   :  { %300 = vmax.xlane.f32.xlu0 %v299_v59  ;;  %v249_v60 = vpop.f32.mrb[10].mxu1  ;;  %v938_v58 = vld [vmem:[%s1201_s4 + $0x10] sm:$0xff]   ;;  %v939_v59 = vld [vmem:[%s1201_s4 + $0x18] sm:$0xff]  }
 0x2f6   :  { %v853_v61 = vpop.f32.mrb[11].mxu1  ;;  %v940_v60 = vld [vmem:[%s1201_s4 + $0x20] sm:$0xff]  }
 0x2f7   :  { %v941_v61 = vld [vmem:[%s1201_s4 + $0x28] sm:$0xff]  }
 0x2fb   :  { %v292_v62 = vpop.f32.mrb[12].mxu1 }
 0x2fc   :  { %v858_v63 = vpop.f32.mrb[13].mxu1  ;;  %v302_v0 = vsel %vm298_vm4, %v292_v62, -inf }
 0x2fd   :  { %303 = vmax.xlane.f32.xlu1 %v302_v0  ;;  %v295_v1 = vpop.f32.mrb[14].mxu1 }
 0x2fe   :  { %v859_v2 = vpop.f32.mrb[15].mxu1 }
 0x30b   :  { %422 = vrot.lane.b32.xlu0 %v203_v41, %s991_s2 }
 0x30e   :  { %419 = vrot.lane.b32.xlu1 %v201_v49, %s991_s2 }
 0x312   :  { %471 = vrot.lane.b32.xlu1 %v202_v55, %s991_s2 }
 0x382   :  { %v301_v3 = vpop.xlane.xlu0 %300 }
 0x383   :  { %v305_v4 = vsub.f32 %v246_v57, %v301_v3  ;;  %v937_v57 = vld [vmem:[%s1201_s4 + $0x8] sm:$0xff]   ;;  %v943_v3 = vld [vmem:[%s1201_s4 + $0x38] sm:$0xff]  }
 0x385   :  { %v307_v5 = vmul.f32 1.442695, %v305_v4 }
 0x386   :  { %v423_v11 = vpop.permute.xlu0 %422 }
 0x387   :  { %948 = vpow2.f32 %v307_v5  ;;  %v428_v13 = vsel %vm205_vm2, %v423_v11, 0 }
 0x38a   :  { %v304_v7 = vpop.xlane.xlu1 %303 }
 0x38b   :  { %v306_v8 = vsub.f32 %v292_v62, %v304_v7  ;;  %v942_v62 = vld [vmem:[%s1201_s4 + $0x30] sm:$0xff]  }
 0x38d   :  { %v309_v9 = vmul.f32 1.442695, %v306_v8 }
 0x38e   :  { %v420_v16 = vpop.permute.xlu1 %419 }
 0x38f   :  { %950 = vpow2.f32 %v309_v9 }
 0x391   :  { %v1102_v10 = vpop.eup %948 }
 0x392   :  { %v317_v12 = vpack.c.bf16 %v1102_v10, %v1102_v10  ;;  %v472_v18 = vpop.permute.xlu1 %471  ;;  %v311_v51 = vsel %vm298_vm4, %v1102_v10, 0.0 }
 0x394   :  { %863 = vmatmul.mubr.msk.bf16.vlgmr.msra.gmra.mrb[0].mxu0 %vm298_vm4, %v317_v12 }
 0x395   :  { %873 = vmatpush3.bf16.xpose.msra.mxu0 %v428_v13  ;;  %874 = vmatprep.mubr.msk.bf16.mxu0 %vm990_vm1, %v989_v19 }
 0x396   :  { %884 = vmatprep.subr.bf16.mxu0 %v989_v19 }
 0x399   :  { %v951_v14 = vpop.eup %950 }
 0x39a   :  { %v318_v15 = vpack.c.bf16 %v951_v14, %v951_v14  ;;  %v314_v53 = vsel %vm298_vm4, %v951_v14, 0.0 }
 0x39c   :  { %869 = vmatmul.mubr.msk.bf16.vlgmr.msra.gmra.mrb[16].mxu1 %vm298_vm4, %v318_v15  ;;  %875 = vmatmul.mubr.msk.bf16.vlgmr.msra.gmra.mrb[4].mxu0 %vm205_vm2, %v420_v16 }
 0x39d   :  { %879 = vmatpush3.bf16.xpose.msra.mxu1 %v480_v17  ;;  %880 = vmatprep.mubr.msk.bf16.mxu1 %vm990_vm1, %v989_v19 }
 0x39e   :  { %890 = vmatprep.subr.bf16.mxu1 %v989_v19  ;;  %886 = vmatprep.mubr.msk.bf16.mxu0 %vm990_vm1, %v989_v19 }
 0x3a4   :  { %881 = vmatmul.mubr.msk.bf16.vlgmr.msra.gmra.mrb[20].mxu1 %vm205_vm2, %v472_v18 }
 0x3a5   :  { %892 = vmatprep.mubr.msk.bf16.mxu1 %vm990_vm1, %v989_v19 }
 0x467   :  { %v1122_v20 = vpop.f32.mrb[0].mxu0 }
 0x468   :  { %v864_v21 = vpop.f32.mrb[1].mxu0 }
 0x469   :  { %v365_v22 = vpop.f32.mrb[2].mxu0 }
 0x46a   :  { %v865_v23 = vpop.f32.mrb[3].mxu0 }
 0x46f   :  { %v1124_v24 = vpop.f32.mrb[16].mxu1  ;;  %v464_v25 = vpop.f32.mrb[4].mxu0 }
 0x470   :  { %v870_v26 = vpop.f32.mrb[17].mxu1  ;;  %v876_v27 = vpop.f32.mrb[5].mxu0  ;;  %v522_v28 = vsel %vm298_vm4, %v464_v25, -inf }
 0x471   :  { %523 = vmax.xlane.f32.xlu0 %v522_v28  ;;  %v411_v29 = vpop.f32.mrb[18].mxu1  ;;  %v467_v30 = vpop.f32.mrb[6].mxu0 }
 0x472   :  { %v871_v31 = vpop.f32.mrb[19].mxu1  ;;  %v877_v32 = vpop.f32.mrb[7].mxu0  ;;  %v803_v29 = vld [vmem:[%s1202_s5] ss:$0 sm:$0xff] }
 0x477   :  { %v516_v33 = vpop.f32.mrb[20].mxu1 }
 0x478   :  { %v882_v34 = vpop.f32.mrb[21].mxu1  ;;  %v525_v35 = vsel %vm298_vm4, %v516_v33, -inf }
 0x479   :  { %526 = vmax.xlane.f32.xlu1 %v525_v35  ;;  %v519_v36 = vpop.f32.mrb[22].mxu1 }
 0x47a   :  { %v883_v37 = vpop.f32.mrb[23].mxu1 }
 0x487   :  { %543 = vrot.lane.b32.xlu0 %v1079_v47, %s991_s2 }
 0x48a   :  { %592 = vrot.lane.b32.xlu1 %v1089_v54, %s991_s2 }
 0x4fe   :  { %v524_v38 = vpop.xlane.xlu0 %523 }
 0x4ff   :  { %v528_v39 = vsub.f32 %v464_v25, %v524_v38 }
 0x501   :  { %v530_v40 = vmul.f32 1.442695, %v528_v39 }
 0x502   :  { %v544_v41 = vpop.permute.xlu0 %543 }
 0x503   :  { %952 = vpow2.f32 %v530_v40  ;;  %v549_v42 = vsel %vm324_vm3, %v544_v41, 0 }
 0x504   :  { %885 = vmatpush3.bf16.msra.mxu0 %v549_v42 }
 0x505   :  { %896 = vmatprep.subr.bf16.mxu0 %v989_v19 }
 0x506   :  { %v527_v43 = vpop.xlane.xlu1 %526 }
 0x507   :  { %v529_v44 = vsub.f32 %v516_v33, %v527_v43 }
 0x509   :  { %v532_v45 = vmul.f32 1.442695, %v529_v44 }
 0x50a   :  { %v593_v46 = vpop.permute.xlu1 %592 }
 0x50b   :  { %954 = vpow2.f32 %v532_v45  ;;  %v598_v47 = vsel %vm324_vm3, %v593_v46, 0 }
 0x50c   :  { %891 = vmatpush3.bf16.msra.mxu1 %v598_v47 }
 0x50d   :  { %v953_v48 = vpop.eup %952 }
 0x50e   :  { %v534_v49 = vsel %vm298_vm4, %v953_v48, 0.0  ;;  %v540_v50 = vpack.c.bf16 %v953_v48, %v953_v48 }
 0x50f   :  { %535 = vadd.xlane.f32.xlu0 %v534_v49 }
 0x510   :  { %887 = vmatmul.mubr.msk.bf16.vlgmr.msra.gmra.mrb[8].mxu0 %vm298_vm4, %v540_v50 }
 0x511   :  { %912 = vmatprep.mubr.msk.bf16.mxu0 %vm990_vm1, %v989_v19  ;;  %897 = vmatpush3.bf16.msra.mxu0 %v936_v56 }
 0x512   :  { %898 = vmatprep.subr.bf16.mxu0 %v989_v19 }
 0x513   :  { %312 = vadd.xlane.f32.xlu0 %v311_v51 }
 0x515   :  { %v955_v52 = vpop.eup %954  ;;  %899 = vmatpush3.bf16.msra.mxu0 %v937_v57 }
 0x516   :  { %v537_v54 = vsel %vm298_vm4, %v955_v52, 0.0  ;;  %v541_v55 = vpack.c.bf16 %v955_v52, %v955_v52  ;;  %900 = vmatprep.subr.bf16.mxu0 %v989_v19 }
 0x517   :  { %315 = vadd.xlane.f32.xlu0 %v314_v53  ;;  %538 = vadd.xlane.f32.xlu1 %v537_v54 }
 0x518   :  { %893 = vmatmul.mubr.msk.bf16.vlgmr.msra.gmra.mrb[24].mxu1 %vm298_vm4, %v541_v55 }
 0x519   :  { %901 = vmatpush3.bf16.msra.mxu0 %v938_v58 }
 0x51a   :  { %902 = vmatprep.subr.bf16.mxu0 %v989_v19 }
 0x51d   :  { %903 = vmatpush3.bf16.msra.mxu0 %v939_v59 }
 0x51e   :  { %904 = vmatprep.subr.bf16.mxu0 %v989_v19 }
 0x521   :  { %905 = vmatpush3.bf16.msra.mxu0 %v940_v60 }
 0x522   :  { %906 = vmatprep.subr.bf16.mxu0 %v989_v19 }
 0x525   :  { %907 = vmatpush3.bf16.msra.mxu0 %v941_v61 }
 0x526   :  { %908 = vmatprep.subr.bf16.mxu0 %v989_v19 }
 0x529   :  { %909 = vmatpush3.bf16.msra.mxu0 %v942_v62 }
 0x52a   :  { %910 = vmatprep.subr.bf16.mxu0 %v989_v19 }
 0x52d   :  { %911 = vmatpush3.bf16.msra.mxu0 %v943_v3 }
 0x59c   :  { %v536_v63 = vpop.xlane.xlu0 %535 }
 0x59d   :  { %956 = vrcp.f32 %v536_v63 }
 0x5a0   :  { %v313_v14 = vpop.xlane.xlu0 %312 }
 0x5a4   :  { %v539_v0 = vpop.xlane.xlu1 %538  ;;  %v316_v15 = vpop.xlane.xlu0 %315 }
 0x5a5   :  { %958 = vrcp.f32 %v539_v0 }
 0x5a6   :  { %960 = vrcp.f32 %v313_v14 }
 0x5a7   :  { %v957_v6 = vpop.eup %956  ;;  %962 = vrcp.f32 %v316_v15 }
 0x5af   :  { %v959_v7 = vpop.eup %958 }
 0x5b0   :  { %v961_v16 = vpop.eup %960 }
 0x5b1   :  { %v963_v17 = vpop.eup %962  ;;  %v416_v21 = vmul.f32 %v961_v16, %v1122_v20 }
 0x5b2   :  { %v417_v22 = vmul.f32 %v963_v17, %v1124_v24 }
 0x5e3   :  { %v585_v1 = vpop.f32.mrb[8].mxu0 }
 0x5e4   :  { %v888_v2 = vpop.f32.mrb[9].mxu0  ;;  %v642_v9 = vmul.f32 %v957_v6, %v585_v1 }
 0x5e5   :  { %v588_v4 = vpop.f32.mrb[10].mxu0 }
 0x5e6   :  { %v889_v5 = vpop.f32.mrb[11].mxu0 }
 0x5eb   :  { %v634_v8 = vpop.f32.mrb[24].mxu1 }
 0x5ec   :  { %v643_v10 = vmul.f32 %v959_v7, %v634_v8  ;;  %v894_v11 = vpop.f32.mrb[25].mxu1 }
 0x5ed   :  { %v637_v19 = vpop.f32.mrb[26].mxu1 }
 0x5ee   :  { %v923_v12 = vpack.i.bf16 %v643_v10, %v642_v9  ;;  %v895_v13 = vpop.f32.mrb[27].mxu1 }
 0x5f0   :  { %924 = vrot.lane.b32.xlu0 %v923_v12, %s991_s2 }
 0x662   :  { %v925_v18 = vpop.permute.xlu0 %924 }
 0x663   :  { %v927_v23 = vunpack.i.h.bf16 %v925_v18  ;;  %v926_v25 = vunpack.i.l.bf16 %v925_v18 }
 0x665   :  { %v653_v26 = vsel %vm205_vm2, %v417_v22, %v927_v23  ;;  %v652_v27 = vsel %vm205_vm2, %v416_v21, %v926_v25 }
 0x666   :  { %v654_v28 = vpack.c.bf16 %v653_v26, %v652_v27 }
 0x668   :  { %913 = vmatmul.mubr.bf16.vlgmr.msra.gmra.mrb[12].mxu0 %v654_v28 }
 0x73b   :  { %v760_v30 = vpop.f32.mrb[12].mxu0 }
 0x73c   :  { %v761_v31 = vadd.f32 %v803_v29, %v760_v30  ;;  %v914_v32 = vpop.f32.mrb[13].mxu0 }
 0x73d   :  { %v763_v20 = vpop.f32.mrb[14].mxu0 }
 0x73e   :  { %767 = vst.msk [vmem:[#allocation2] sm:$0xff] %vm27_vm0, %v761_v31  ;;  %v764_v24 = vadd.f32 %v803_v29, %v763_v20  ;;  %v915_v33 = vpop.f32.mrb[15].mxu0 }
 0x740   :  { %768 = vst.msk [vmem:[#allocation2 + $0x8] sm:$0xff] %vm27_vm0, %v764_v24 }
 0x741   :  { %975 = shalt.err (!%p972_p4)
}
 0x742   :  { %s976_s10 = scalar_lea.hbm %s1203_s6, 256 }
 0x743   :  { %p977_p5 = scmp.ne.s32.totalorder %s1203_s6, %s976_s10  ;;  %p980_p6 = scmp.lt.u32.totalorder %s976_s10, %s1203_s6 }
 0x745   :  { %p982_p7 = pnand %p980_p6, %p977_p5 }
 0x747   :  { %985 = shalt.err (!%p982_p7)
}
 0x748   :  { %s993_s1 = smov 128   ;;  %s994_s2 = smov 8  }
 0x749   :  { %780 = dma.vmem_to_hbm [thread:$0]  %s775_s7, 256, %s1203_s6, [#allocation3], %s993_s1, %s993_s1, %s994_s2  }
 0x74a   :  { %986 = dma.done.wait [#allocation3], 256  }
 0x74b   :  { %987 = vsyncadd [#allocation3], 4294967040 }
 0x74c   :  { %784 = vsyncpa [#allocation3], 1 }

</bundles_post_ra>
